<compile_context>
chip_gen: v5e
topology: v5e:2x2
jax: 0.10.0
libtpu: 0.0.40
codegen_flags: <defaults>
</compile_context>

<pallas_src>
import math

import jax
import jax.numpy as jnp
from jax import lax
from jax.experimental import pallas as pl
from jax.experimental.pallas import tpu as pltpu


def _vmem_capacity_bytes():
    """Physical VMEM of the local TPU; conservative v7x fallback (64 MiB) if unknown."""
    fallback = 64 * 1024 * 1024
    try:
        info = pltpu.get_tpu_info()
        cap = getattr(info, "vmem_capacity_bytes", None)
        if cap:
            return int(cap)
    except Exception:
        pass
    return fallback


def _pick_q_tile(q_len, k_len, d_model, in_itemsize, out_itemsize, attn_itemsize,
                 budget, return_attn, has_mask):
    """Largest q tile that divides q_len, respects the dtype's native sublane tile,
    and keeps the FULL per-step VMEM footprint (double-buffered resident K/V + q/ctx/
    attn/mask blocks + f32 temporaries) inside `budget`. Returns (tq, footprint)."""

    def footprint(tq):
        kv = 2 * 2 * k_len * d_model * in_itemsize              # K + V, double-buffered
        q_in = 2 * tq * d_model * in_itemsize                   # q blocks (x2 buffers)
        ctx_out = 2 * tq * d_model * out_itemsize               # ctx blocks (x2 buffers)
        attn_out = 2 * tq * k_len * attn_itemsize if return_attn else 0
        mask_in = 2 * tq * k_len * 4 if has_mask else 0         # int32 mask blocks
        temps = 2 * tq * k_len * 4 + tq * d_model * 4           # f32 score/prob + ctx temps
        return kv + q_in + ctx_out + attn_out + mask_in + temps

    # Respect native sublane tiling: f32 -> 8 rows, bf16 -> 16, int8/fp8 -> 32.
    min_rows = {4: 8, 2: 16, 1: 32}.get(in_itemsize, 8)
    candidates = [t for t in (2048, 1024, 512, 256, 128, 64, 32, 16, 8)
                  if min_rows <= t <= q_len and q_len % t == 0]
    for tq in candidates:
        fp = footprint(tq)
        if fp <= budget:
            return tq, fp
    if candidates:
        # Nothing fits: degrade to the smallest aligned tile (minimal overshoot)
        # instead of silently falling back to an untiled q block.
        # TODO(synk): switch to a k-tiled two-pass (online-softmax) kernel here.
        tq = candidates[-1]
        return tq, footprint(tq)
    return q_len, footprint(q_len)   # tiny / indivisible q_len: full-extent block


def _make_kernel(inv_sqrt_dim, mm_dtype, has_mask, return_attn):
    """Kernel factory; has_mask / return_attn are trace-time Python constants."""

    def kernel(*refs):
        if has_mask:
            q_ref, k_ref, v_ref, m_ref = refs[:4]
            out_refs = refs[4:]
        else:
            q_ref, k_ref, v_ref = refs[:3]
            m_ref = None
            out_refs = refs[3:]

        # Fold 1/sqrt(dim) into q: O(TQ*D) VPU work instead of O(TQ*K) on the score.
        q = (q_ref[0] * inv_sqrt_dim).astype(mm_dtype)           # (TQ, D)
        k = k_ref[0].astype(mm_dtype)                            # (K,  D)

        # score = q @ k^T, contracting the last dims directly (no in-kernel transpose,
        # keeps the XLU free for the softmax reductions).
        score = lax.dot_general(
            q, k,
            dimension_numbers=(((1,), (1,)), ((), ())),
            preferred_element_type=jnp.float32)                  # (TQ, K) f32

        if m_ref is not None:
            # mask == True  =>  masked_fill_(-inf), matching the PyTorch reference.
            score = jnp.where(m_ref[0] != 0, -jnp.inf, score)

        # Numerically-stable softmax along keys with EXACT normalization so the
        # returned probabilities sum to 1 (approx reciprocal removed).
        score = score - jnp.max(score, axis=-1, keepdims=True)
        e = jnp.exp(score)
        attn = e / jnp.sum(e, axis=-1, keepdims=True)            # (TQ, K) f32

        # context = attn @ v (MXU, f32 accumulation).
        ctx = lax.dot_general(
            attn.astype(mm_dtype), v_ref[0].astype(mm_dtype),
            dimension_numbers=(((1,), (0,)), ((), ())),
            preferred_element_type=jnp.float32)                  # (TQ, D) f32

        ctx_ref = out_refs[0]
        ctx_ref[0] = ctx.astype(ctx_ref.dtype)
        if return_attn:
            attn_ref = out_refs[1]
            attn_ref[0] = attn.astype(attn_ref.dtype)

    return kernel


def scaled_dot_product_attention(query, key, value, mask=None, dim=None, *,
                                 return_attn=True, prefer_bf16_matmul=False,
                                 attn_dtype=None):
    """Pallas implementation of ScaledDotProductAttention.forward.

    query: (B, q_len, d_model); key/value: (B, k_len, d_model).
    mask: optional boolean/int tensor with B*q_len*k_len elements (True == masked).
    Returns (context, attn) when return_attn=True, else just context.

    NOTE (lane density / MXU fill): if this is used per attention head with
    d_model < 128, fold the heads into the last dim before calling so the ctx
    output and the QK^T contraction dim are >= 128/256 wide.
    """
    B, q_len, d_model = query.shape
    _, k_len, _ = key.shape
    if dim is None:
        dim = d_model
    inv_sqrt_dim = 1.0 / math.sqrt(dim)

    in_itemsize = jnp.dtype(query.dtype).itemsize
    out_itemsize = in_itemsize
    attn_dt = jnp.dtype(attn_dtype) if attn_dtype is not None else jnp.dtype(query.dtype)
    attn_itemsize = attn_dt.itemsize

    # Optional bf16 MXU operands (f32 accumulation) for f32 inputs.
    if prefer_bf16_matmul and query.dtype == jnp.float32:
        mm_dtype = jnp.bfloat16
    else:
        mm_dtype = query.dtype

    has_mask = mask is not None
    inputs = [query, key, value]
    if has_mask:
        # PyTorch does mask.view(score.size()); reshape + int32 for a clean TPU layout.
        inputs.append(jnp.reshape(mask, (B, q_len, k_len)).astype(jnp.int32))

    # Hardware-derived VMEM budget (not hard-coded v7x numbers).
    capacity = _vmem_capacity_bytes()
    budget = int(0.8 * capacity)
    tq, step_bytes = _pick_q_tile(q_len, k_len, d_model, in_itemsize, out_itemsize,
                                  attn_itemsize, budget, return_attn, has_mask)
    n_q_tiles = q_len // tq

    kernel = _make_kernel(inv_sqrt_dim, mm_dtype, has_mask, return_attn)

    in_specs = [
        pl.BlockSpec((1, tq, d_model), lambda b, qi: (b, qi, 0)),       # q tile
        pl.BlockSpec((1, k_len, d_model), lambda b, qi: (b, 0, 0)),     # K resident per batch
        pl.BlockSpec((1, k_len, d_model), lambda b, qi: (b, 0, 0)),     # V resident per batch
    ]
    if has_mask:
        in_specs.append(pl.BlockSpec((1, tq, k_len), lambda b, qi: (b, qi, 0)))

    out_shapes = [jax.ShapeDtypeStruct((B, q_len, d_model), query.dtype)]
    out_specs = [pl.BlockSpec((1, tq, d_model), lambda b, qi: (b, qi, 0))]
    if return_attn:
        out_shapes.append(jax.ShapeDtypeStruct((B, q_len, k_len), attn_dt))
        out_specs.append(pl.BlockSpec((1, tq, k_len), lambda b, qi: (b, qi, 0)))

    grid_spec = pltpu.PrefetchScalarGridSpec(
        num_scalar_prefetch=0,
        grid=(B, n_q_tiles),
        in_specs=in_specs,
        out_specs=out_specs,
    )

    # Scoped VMEM limit: enough for the measured footprint (+ headroom), capped at
    # the chip's physical capacity (128 MiB v5e/v6e, 64 MiB v7x).
    vmem_limit = int(min(capacity, max(32 * 1024 * 1024, 1.25 * step_bytes)))

    bytes_accessed = (
        in_itemsize * B * (q_len * d_model + 2 * k_len * d_model)       # q, k, v in
        + out_itemsize * B * q_len * d_model                            # ctx out
        + (attn_itemsize * B * q_len * k_len if return_attn else 0)     # attn out
        + (4 * B * q_len * k_len if has_mask else 0))                   # mask in
    cost = pl.CostEstimate(
        flops=4 * B * q_len * k_len * d_model,                          # two matmuls
        transcendentals=B * q_len * k_len,                              # exp
        bytes_accessed=bytes_accessed)

    results = pl.pallas_call(
        kernel,
        out_shape=out_shapes,
        grid_spec=grid_spec,
        compiler_params=pltpu.CompilerParams(
            dimension_semantics=("parallel", "parallel"),
            vmem_limit_bytes=vmem_limit,
        ),
        cost_estimate=cost,
    )(*inputs)

    if return_attn:
        context, attn = results
        return context, attn
    (context,) = results
    return context


def _reference(query, key, value, dim, mask=None):
    score = jnp.einsum("bqd,bkd->bqk", query, key,
                       precision=lax.Precision.HIGHEST) / math.sqrt(dim)
    if mask is not None:
        score = jnp.where(jnp.reshape(mask, score.shape), -jnp.inf, score)
    attn = jax.nn.softmax(score, axis=-1)
    context = jnp.einsum("bqk,bkd->bqd", attn, value,
                         precision=lax.Precision.HIGHEST)
    return context, attn


if __name__ == "__main__":
    # Small deterministic inputs: batch=2, q_len=8, k_len=16, d_model=32.
    B, Q, K, D = 2, 8, 16, 32
    root = jax.random.PRNGKey(0)
    kq, kk, kv, km = jax.random.split(root, 4)
    query = jax.random.normal(kq, (B, Q, D), dtype=jnp.float32)
    key_ = jax.random.normal(kk, (B, K, D), dtype=jnp.float32)
    value = jax.random.normal(kv, (B, K, D), dtype=jnp.float32)

    # 1) Default path: context + attention (exact softmax normalization).
    context, attn = scaled_dot_product_attention(query, key_, value, dim=D)
    jax.block_until_ready((context, attn))
    ctx_ref, attn_ref = _reference(query, key_, value, D)
    assert jnp.allclose(context, ctx_ref, atol=2e-3, rtol=2e-3)
    assert jnp.allclose(attn, attn_ref, atol=2e-3, rtol=2e-3)
    # Approx reciprocal removed: returned probabilities sum to 1.
    assert jnp.allclose(jnp.sum(attn, axis=-1), 1.0, atol=1e-4)

    # 2) Masked path (True == masked, as in masked_fill_ with -inf).
    mask = jax.random.uniform(km, (B, Q, K)) > 0.7
    mask = mask.at[:, :, 0].set(False)      # keep >=1 key per row (avoid NaN rows)
    ctx_m, attn_m = scaled_dot_product_attention(query, key_, value, mask=mask, dim=D)
    jax.block_until_ready((ctx_m, attn_m))
    ctx_m_ref, attn_m_ref = _reference(query, key_, value, D, mask=mask)
    assert jnp.allclose(ctx_m, ctx_m_ref, atol=2e-3, rtol=2e-3)
    assert jnp.allclose(attn_m, attn_m_ref, atol=2e-3, rtol=2e-3)
    assert jnp.allclose(jnp.where(mask, attn_m, 0.0), 0.0)   # masked entries are zero

    # 3) Context-only path (skips the B*Q*K attention writeback to HBM).
    ctx_only = scaled_dot_product_attention(query, key_, value, dim=D, return_attn=False)
    jax.block_until_ready(ctx_only)
    assert jnp.allclose(ctx_only, ctx_ref, atol=2e-3, rtol=2e-3)

    # 4) Opt-in bf16 MXU operands for f32 inputs (higher MXU throughput on v6e/v7x).
    ctx_bf, attn_bf = scaled_dot_product_attention(
        query, key_, value, dim=D, prefer_bf16_matmul=True)
    jax.block_until_ready((ctx_bf, attn_bf))
    assert jnp.allclose(ctx_bf, ctx_ref, atol=3e-2, rtol=3e-2)
    assert jnp.allclose(attn_bf, attn_ref, atol=3e-2, rtol=3e-2)

    print("KERNEL_OK")
</pallas_src>

<mosaic_0001>
module attributes {stable_mosaic.version = 11 : i64} {
  func.func @kernel(%arg0: i32, %arg1: i32, %arg2: memref<1x8x32xf32, #tpu.memory_space<vmem>>, %arg3: memref<1x16x32xf32, #tpu.memory_space<vmem>>, %arg4: memref<1x16x32xf32, #tpu.memory_space<vmem>>, %arg5: memref<1x8x32xf32, #tpu.memory_space<vmem>>, %arg6: memref<1x8x16xf32, #tpu.memory_space<vmem>>) attributes {dimension_semantics = [#tpu.dimension_semantics<parallel>, #tpu.dimension_semantics<parallel>], iteration_bounds = array<i64: 2, 1>, scalar_prefetch = 0 : i64, scratch_operands = 0 : i64, tpu.core_type = #tpu.core_type<tc>, window_params = [{transform_indices = @transform_0, window_bounds = array<i64: 1, 8, 32>}, {transform_indices = @transform_1, window_bounds = array<i64: 1, 16, 32>}, {transform_indices = @transform_2, window_bounds = array<i64: 1, 16, 32>}, {transform_indices = @transform_3, window_bounds = array<i64: 1, 8, 32>}, {transform_indices = @transform_4, window_bounds = array<i64: 1, 8, 16>}]} {
    %c0 = arith.constant 0 : index
    %c0_0 = arith.constant 0 : index
    %c0_1 = arith.constant 0 : index
    %0 = vector.load %arg2[%c0, %c0_0, %c0_1] : memref<1x8x32xf32, #tpu.memory_space<vmem>>, vector<1x8x32xf32>
    %1 = vector.shape_cast %0 : vector<1x8x32xf32> to vector<8x32xf32>
    %cst = arith.constant 0.176776692 : f32
    %2 = vector.broadcast %cst : f32 to vector<8x32xf32>
    %3 = arith.mulf %1, %2 : vector<8x32xf32>
    %c0_2 = arith.constant 0 : index
    %c0_3 = arith.constant 0 : index
    %c0_4 = arith.constant 0 : index
    %4 = vector.load %arg3[%c0_2, %c0_3, %c0_4] : memref<1x16x32xf32, #tpu.memory_space<vmem>>, vector<1x16x32xf32>
    %5 = vector.shape_cast %4 : vector<1x16x32xf32> to vector<16x32xf32>
    %cst_5 = arith.constant dense<0.000000e+00> : vector<8x16xf32>
    %6 = tpu.matmul %3, %5, %cst_5 {dimension_numbers = #tpu.dot_dimension_numbers<[1], [1], [0], [0], [0, 0, 1, 0], [], []>} : vector<8x32xf32>, vector<16x32xf32>, vector<8x16xf32> -> vector<8x16xf32>
    %cst_6 = arith.constant dense<0xFF800000> : vector<8xf32>
    %7 = vector.multi_reduction <maximumf>, %6, %cst_6 [1] : vector<8x16xf32> to vector<8xf32>
    %8 = vector.shape_cast %7 : vector<8xf32> to vector<8x1xf32>
    %9 = vector.broadcast %8 : vector<8x1xf32> to vector<8x16xf32>
    %10 = arith.subf %6, %9 : vector<8x16xf32>
    %11 = math.exp %10 : vector<8x16xf32>
    %cst_7 = arith.constant dense<0.000000e+00> : vector<8xf32>
    %12 = vector.multi_reduction <add>, %11, %cst_7 [1] : vector<8x16xf32> to vector<8xf32>
    %13 = vector.shape_cast %12 : vector<8xf32> to vector<8x1xf32>
    %14 = vector.broadcast %13 : vector<8x1xf32> to vector<8x16xf32>
    %15 = arith.divf %11, %14 : vector<8x16xf32>
    %c0_8 = arith.constant 0 : index
    %c0_9 = arith.constant 0 : index
    %c0_10 = arith.constant 0 : index
    %16 = vector.load %arg4[%c0_8, %c0_9, %c0_10] : memref<1x16x32xf32, #tpu.memory_space<vmem>>, vector<1x16x32xf32>
    %17 = vector.shape_cast %16 : vector<1x16x32xf32> to vector<16x32xf32>
    %cst_11 = arith.constant dense<0.000000e+00> : vector<8x32xf32>
    %18 = tpu.matmul %15, %17, %cst_11 {dimension_numbers = #tpu.dot_dimension_numbers<[1], [0], [0], [1], [0, 0, 1, 1], [], []>} : vector<8x16xf32>, vector<16x32xf32>, vector<8x32xf32> -> vector<8x32xf32>
    %c0_12 = arith.constant 0 : index
    %c0_13 = arith.constant 0 : index
    %c0_14 = arith.constant 0 : index
    %19 = vector.load %arg5[%c0_12, %c0_13, %c0_14] : memref<1x8x32xf32, #tpu.memory_space<vmem>>, vector<1x8x32xf32>
    %20 = vector.shape_cast %19 : vector<1x8x32xf32> to vector<8x32xf32>
    %21 = vector.shape_cast %18 : vector<8x32xf32> to vector<1x8x32xf32>
    tpu.vector_store %arg5[%c0_12, %c0_13, %c0_14], %21 {strides = array<i32>} : memref<1x8x32xf32, #tpu.memory_space<vmem>>, vector<1x8x32xf32>,
    %c0_15 = arith.constant 0 : index
    %c0_16 = arith.constant 0 : index
    %c0_17 = arith.constant 0 : index
    %22 = vector.load %arg6[%c0_15, %c0_16, %c0_17] : memref<1x8x16xf32, #tpu.memory_space<vmem>>, vector<1x8x16xf32>
    %23 = vector.shape_cast %22 : vector<1x8x16xf32> to vector<8x16xf32>
    %24 = vector.shape_cast %15 : vector<8x16xf32> to vector<1x8x16xf32>
    tpu.vector_store %arg6[%c0_15, %c0_16, %c0_17], %24 {strides = array<i32>} : memref<1x8x16xf32, #tpu.memory_space<vmem>>, vector<1x8x16xf32>,
    return
  }
  func.func @transform_0(%arg0: i32, %arg1: i32) -> (i32, i32, i32) {
    %c0_i32 = arith.constant 0 : i32
    %c0_i32_0 = arith.constant 0 : i32
    return %arg0, %arg1, %c0_i32 : i32, i32, i32
  }
  func.func @transform_1(%arg0: i32, %arg1: i32) -> (i32, i32, i32) {
    %c0_i32 = arith.constant 0 : i32
    %c0_i32_0 = arith.constant 0 : i32
    %c0_i32_1 = arith.constant 0 : i32
    return %arg0, %c0_i32, %c0_i32_0 : i32, i32, i32
  }
  func.func @transform_2(%arg0: i32, %arg1: i32) -> (i32, i32, i32) {
    %c0_i32 = arith.constant 0 : i32
    %c0_i32_0 = arith.constant 0 : i32
    %c0_i32_1 = arith.constant 0 : i32
    return %arg0, %c0_i32, %c0_i32_0 : i32, i32, i32
  }
  func.func @transform_3(%arg0: i32, %arg1: i32) -> (i32, i32, i32) {
    %c0_i32 = arith.constant 0 : i32
    %c0_i32_0 = arith.constant 0 : i32
    return %arg0, %arg1, %c0_i32 : i32, i32, i32
  }
  func.func @transform_4(%arg0: i32, %arg1: i32) -> (i32, i32, i32) {
    %c0_i32 = arith.constant 0 : i32
    %c0_i32_0 = arith.constant 0 : i32
    return %arg0, %arg1, %c0_i32 : i32, i32, i32
  }
}

</mosaic_0001>

<bundles_post_ra>
// kernel: tpu_custom_call.1
= control target key start
LH: loop header
LB: loop body
LE: loop exit
PB: predicated region body
PF: predicated region fallthrough
CT: control target
= control target key end

     0   :  { %s1136_s0 = inlined_call_operand.hbm [shape: f32[2,8,32], index: 0, kind: input, shape index: {}]   ;;  %s1137_s1 = inlined_call_operand.hbm [shape: f32[2,16,32], index: 1, kind: input, shape index: {}]   ;;  %s1138_s2 = inlined_call_operand.hbm [shape: f32[2,16,32], index: 2, kind: input, shape index: {}]   ;;  %s1139_s3 = inlined_call_operand.hbm [shape: f32[2,8,32], index: 3, kind: output, shape index: {0}]   ;;  %s1140_s4 = inlined_call_operand.hbm [shape: f32[2,8,16], index: 4, kind: output, shape index: {1}]  }
   0x1   :  { %1144 = sst [smem:[#allocation19_spill]] %s1137_s1 }
   0x2   :  { %10 = vsyncpa [#allocation3], 0 }
   0x3   :  { %12 = vsyncpa [#allocation3 + $0x1], 0 }
   0x4   :  { %13 = vsyncpa [#allocation6], 0 }
   0x5   :  { %15 = vsyncpa [#allocation6 + $0x1], 0 }
   0x6   :  { %16 = vsyncpa [#allocation4], 0 }
   0x7   :  { %18 = vsyncpa [#allocation4 + $0x1], 0 }
   0x8   :  { %19 = vsyncpa [#allocation10], 0 }
   0x9   :  { %21 = vsyncpa [#allocation10 + $0x1], 0  ;;  %s956_s15 = smov 0   ;;  %s958_s16 = smov 0  }
   0xa   :  { %s960_s17 = smov 0   ;;  %s962_s18 = smov 0  }
   0xb   :  { %s964_s19 = smov 0   ;;  %s966_s20 = smov 0  }
   0xc LB: > { %1145 = sst [smem:[#allocation15_spill]] %s915_s17  ;;  %s987_s21 = sadd.s32 4294967295, %s927_s20   ;;  %s927_s20 = sphi %s966_s20, %s27_s20   ;;  %s923_s19 = sphi %s964_s19, %s1162_s19   ;;  %s919_s18 = sphi %s962_s18, %s1161_s18   ;;  %s915_s17 = sphi %s960_s17, %s1157_s17   ;;  %s911_s16 = sphi %s958_s16, %s1160_s16   ;;  %s907_s15 = sphi %s956_s15, %s1159_s15  }
   0xd   : > { %s607_s22 = sadd.s32 4294967294, %s927_s20   ;;  %s39_s23 = sadd.s32 1, %s923_s19 }
   0xe   : > { %s48_s24 = sadd.s32 1, %s915_s17  ;;  %p41_p0 = scmp.ge.s32.totalorder %s39_s23, 2 }
   0xf   : > { %p55_p1 = scmp.ne.s32.totalorder %s915_s17, %s911_s16  ;;  %p56_p2 = scmp.eq.s32.totalorder %s927_s20, 0 }
  0x10   : > { %p61_p3 = scmp.ne.s32.totalorder %s911_s16, %s907_s15  ;;  %s1164_s23 = smov (%p41_p0, %s39_s23), 0 }
  0x11   : > { %1146 = sst [smem:[#allocation16_spill]] %s1164_s23  ;;  %p999_p4 = por %p56_p2, %p55_p1 }
  0x12   : > { %p62_p5 = scmp.eq.s32.totalorder %s987_s21, 0  ;;  %s43_s26 = ssub.s32 %s923_s19, %s1164_s23 }
  0x13   : > { %p139_p6 = scmp.eq.s32.totalorder %s987_s21, 1  ;;  %p46_p7 = scmp.eq.s32.totalorder %s43_s26, 0 }
  0x14   : > { %p1007_p8 = por %p62_p5, %p61_p3  ;;  %p145_p10 = scmp.eq.s32.totalorder %s607_s22, 1 }
  0x15   : > { %p1011_p9 = por %p139_p6, %p55_p1  ;;  %p609_p12 = scmp.ge.s32.totalorder %s927_s20, 2 }
  0x16   : > { %s1016_s29 = scalar_select %p46_p7, %s915_s17, %s48_s24  }
  0x17   : > { %p1018_p11 = por %p145_p10, %p61_p3  ;;  %p663_p13 = scmp.lt.s32.totalorder %s927_s20, 2 }
  0x18   : > { %1150 = sst [smem:[#allocation17_spill]] %s1016_s29  ;;  %s1025_s5 = sand.u32 1, %s915_s17  }
  0x19   : > { %s1151_s30 = scalar_select %p1018_p11, 1, 0 }
  0x1a   : > { %s213_s6 = sand.u32 1, %s927_s20   ;;  %s612_s7 = sshll.u32 %s1025_s5, 4 }
  0x1b   : > { %1152 = sst [smem:[#allocation18_spill]] %s1151_s30  ;;  %p1031_p0 = pnand %p663_p13, %p999_p4 }
  0x1c   : > { %s634_s9 = sshll.u32 %s923_s19, 4  ;;  %s1154_s1 = sld [smem:[#allocation19_spill]] }
  0x1d   : > { %s217_s14 = scalar_lea.vmem [#allocation5], %s612_s7  ;;  %s214_s24 = scalar_lea.sflag [#allocation6], %s213_s6 }
  0x1e   : > { %s225_s22 = sshll.u32 %s217_s14, 4  ;;  %s929_s25 = smov 128   ;;  %s226_s22 = int_to_ptr.vmem [resolvable:$true] %s225_s22 }
  0x1f   : > { %s930_s26 = smov 8   ;;  %s244_s17 = scalar_lea.hbm %s1138_s2, %s634_s9 }
  0x20   : > { %s245_s10 = sshll.u32 %s244_s17, 4  ;;  %s239_s11 = scalar_lea.vmem [#allocation7], %s612_s7  ;;  %s246_s10 = int_to_ptr.hbm [resolvable:$true] %s245_s10 }
  0x21   : > { %p618_p1 = scmp.ge.s32.totalorder %s927_s20, 1  ;;  %p255_p2 = scmp.lt.s32.totalorder %s927_s20, 3 }
  0x22   : > { %s222_s12 = scalar_lea.hbm %s1154_s1, %s634_s9  ;;  %s610_s6 = sshll.u32 %s1025_s5, 3 }
  0x23   : > { %s223_s13 = sshll.u32 %s222_s12, 4  ;;  %s247_s12 = sshll.u32 %s239_s11, 4  ;;  %s224_s13 = int_to_ptr.hbm [resolvable:$true] %s223_s13  ;;  %s248_s12 = int_to_ptr.vmem [resolvable:$true] %s247_s12 }
  0x24   : > { %652 = dma.hbm_to_vmem [thread:$0]  (!%p1031_p0), %s224_s13, 256, %s226_s22, %s214_s24, %s929_s25, %s929_s25, %s930_s26  }
  0x25   : > { %p256_p3 = pnand %p618_p1, %p255_p2  ;;  %s611_s14 = sshll.u32 %s923_s19, 3 }
  0x26   : > { %s202_s13 = scalar_lea.hbm %s1136_s0, %s611_s14  ;;  %s197_s23 = scalar_lea.vmem [#allocation2], %s610_s6 }
  0x27   : > { %s204_s22 = sshll.u32 %s202_s13, 4  ;;  %s206_s29 = sshll.u32 %s197_s23, 4  ;;  %s205_s22 = int_to_ptr.hbm [resolvable:$true] %s204_s22  ;;  %s207_s29 = int_to_ptr.vmem [resolvable:$true] %s206_s29 }
  0x28   : > { %s194_s17 = scalar_lea.sflag [#allocation3], %s1025_s5  ;;  %259 = sbr.rel (%p256_p3) target bundleno = 577 (0x241), region = 32 }
  0x29   : > { %649 = dma.hbm_to_vmem [thread:$0]  (!%p1031_p0), %s205_s22, 128, %s207_s29, %s194_s17  }
  0x2a   : > { %655 = dma.hbm_to_vmem [thread:$0]  (!%p1031_p0), %s246_s10, 256, %s248_s12, %s214_s24, %s929_s25, %s929_s25, %s930_s26  }
  0x2b   : > { %s1057_s7 = sand.u32 (!%p256_p3), 1, %s911_s16  }
  0x2c   : > { %s1060_s9 = sshll.u32 (!%p256_p3), %s1057_s7, 3  ;;  %s262_s1 = scalar_lea.sflag (!%p256_p3), [#allocation3], %s1057_s7 }
  0x2d   : > { %s265_s30 = scalar_lea.vmem [#allocation2], %s1060_s9 }
  0x2e   : > { %890 = dma.done.wait (%p1007_p8), %s262_s1, 128  }
  0x2f   : > { %892 = vsyncadd (%p1007_p8), %s262_s1, 4294967168  ;;  %s271_s5 = sand.u32 1, %s987_s21   ;;  %s620_s8 = sshll.u32 %s1057_s7, 4 }
  0x30   : > { %s272_s24 = scalar_lea.sflag [#allocation6], %s271_s5  ;;  %s275_s25 = scalar_lea.vmem [#allocation5], %s620_s8 }
  0x31   : > { %894 = dma.done.wait (%p1007_p8), %s272_s24, 512  }
  0x32   : > { %896 = vsyncadd (%p1007_p8), %s272_s24, 4294966784  ;;  %vm330_vm0 = vcmask 261120   ;;  %v329_v0 = vld [vmem:[%s275_s25 + $0x8] sm:$0xff]  ;;  %v328_v2 = vld [vmem:[%s275_s25] sm:$0xff]  ;;  %vm360_vm1 = vcmask 130048   ;;  %s285_s21 = scalar_lea.vmem [#allocation7], %s620_s8 }
  0x33   : > { %624 = vmatpush.xpose.msk.msra.mxu0 %vm330_vm0, %v329_v0  ;;  %v326_v1 = vld [vmem:[%s265_s30] sm:$0xff]  ;;  %v385_v12 = vld [vmem:[%s285_s21] sm:$0xff]  ;;  %s630_s27 = sshll.u32 %s919_s18, 3  ;;  %s325_s12 = scalar_lea.vmem [#allocation9], %s1060_s9 }
  0x34   : > { %v327_v3 = vmul.f32 0.17677669, %v326_v1  ;;  %v386_v11 = vld [vmem:[%s285_s21 + $0x8] sm:$0xff]  ;;  %s444_s11 = scalar_lea.hbm %s1140_s4, %s630_s27  ;;  %s446_s6 = sshll.u32 %s325_s12, 4  ;;  %s447_s6 = int_to_ptr.vmem [resolvable:$true] %s446_s6 }
  0x35   : > { %404 = vmatpush.msra.mxu1 %v386_v11  ;;  %s448_s14 = sshll.u32 %s444_s11, 4  ;;  %s418_s13 = scalar_lea.sflag [#allocation10], %s1057_s7  ;;  %s449_s14 = int_to_ptr.hbm [resolvable:$true] %s448_s14 }
  0x36   : > { %s823_s18 = sshra.s32 %s449_s14, 4  ;;  %s829_s17 = scalar_lea.hbm %s1140_s4, 16  ;;  %s824_s18 = int_to_ptr.hbm [resolvable:$true] %s823_s18 }
  0x37   : > { %625 = vmatpush.xpose.msk.msra.mxu0 %vm330_vm0, %v328_v2  ;;  %405 = vmatpush.msra.mxu1 %v385_v12  ;;  %s825_s22 = scalar_lea.hbm %s824_s18, 8  ;;  %p830_p7 = scmp.lt.s32.totalorder %s824_s18, %s1140_s4 }
  0x38   : > { %p826_p4 = scmp.ne.s32.totalorder %s824_s18, %s825_s22  ;;  %p831_p8 = scmp.lt.s32.totalorder %s829_s17, %s825_s22 }
  0x3a   : > { %626 = vmatmul.msk.f32.vlgmr.msra.gmra.mxu0 %vm330_vm0, %v327_v3  ;;  %p827_p5 = pnand %p826_p4, %p1011_p9  ;;  %p832_p10 = por %p831_p8, %p830_p7 }
  0x3c   : > { %p828_p6 = pneg %p827_p5 }
  0x3e   : > { %p833_p13 = pnand %p832_p10, %p828_p6 }
  0xb7   : > { %v357_v4 = vpop.f32.mrf.mxu0 }
  0xb8   : > { %v361_v5 = vsel %vm360_vm1, %v357_v4, -inf }
  0xb9   : > { %362 = vmax.xlane.f32.xlu0 %v361_v5 }
 0x12c   : > { %v363_v6 = vpop.xlane.xlu0 %362 }
 0x12d   : > { %v364_v7 = vsub.f32 %v357_v4, %v363_v6 }
 0x12f   : > { %v365_v8 = vmul.f32 1.442695, %v364_v7 }
 0x131   : > { %715 = vpow2.f32 %v365_v8 }
 0x137   : > { %v716_v9 = vpop.eup %715 }
 0x138   : > { %v367_v10 = vsel %vm360_vm1, %v716_v9, 0.0 }
 0x139   : > { %368 = vadd.xlane.f32.xlu0 %v367_v10 }
 0x1ac   : > { %v369_v13 = vpop.xlane.xlu0 %368 }
 0x1ad   : > { %717 = vrcp.f32 %v369_v13  ;;  %v381_v17 = vand.u32 2147483648, %v369_v13  ;;  %v379_v19 = vand.u32 2147483647, %v369_v13  ;;  %vm375_vm3 = vweird.f32 %v369_v13 }
 0x1af   : > { %v382_v21 = vor.u32 1.1754944e-38, %v381_v17  ;;  %vm380_vm5 = vcmp.eq.f32.partialorder %v379_v19, 8.507059e+37 }
 0x1b3   : > { %v718_v14 = vpop.eup %717 }
 0x1b4   : > { %v371_v15 = vmul.f32 %v718_v14, %v369_v13  ;;  %vm376_vm2 = vweird.f32 %v718_v14 }
 0x1b5   : > { %vm377_vm4 = vmor %vm375_vm3, %vm376_vm2 }
 0x1b6   : > { %v372_v16 = vsub.f32 1.0, %v371_v15 }
 0x1b8   : > { %v373_v18 = vmul.f32 %v718_v14, %v372_v16 }
 0x1ba   : > { %v374_v20 = vadd.f32 %v718_v14, %v373_v18 }
 0x1bc   : > { %v378_v22 = vsel %vm377_vm4, %v718_v14, %v374_v20 }
 0x1bd   : > { %v383_v23 = vsel %vm380_vm5, %v382_v21, %v378_v22 }
 0x1be   : > { %v384_v24 = vmul.f32 %v716_v9, %v383_v23 }
 0x1c0   : > { %627 = vmatmul.msk.f32.vlgmr.msra.gmra.mxu1 %vm360_vm1, %v384_v24  ;;  %411 = vst.msk [vmem:[%s325_s12] sm:$0xff] %vm360_vm1, %v384_v24 }
 0x1c1   : > { %836 = shalt.err (!%p833_p13)
}
 0x1c2   : > { %643 = dma.vmem_to_hbm [thread:$0]  (%p1011_p9), %s447_s6, 128, %s449_s14, %s418_s13  }
 0x1c3   : > { %s429_s24 = scalar_lea.hbm %s1139_s3, %s630_s27  ;;  %s318_s25 = scalar_lea.vmem [#allocation8], %s1060_s9 }
 0x1c4   : > { %s431_s21 = sshll.u32 %s318_s25, 4  ;;  %s433_s26 = sshll.u32 %s429_s24, 4  ;;  %s432_s21 = int_to_ptr.vmem [resolvable:$true] %s431_s21  ;;  %s434_s26 = int_to_ptr.hbm [resolvable:$true] %s433_s26 }
 0x1c5   : > { %s413_s10 = scalar_lea.sflag [#allocation4], %s1057_s7  ;;  %s851_s11 = sshra.s32 %s434_s26, 4  ;;  %s852_s11 = int_to_ptr.hbm [resolvable:$true] %s851_s11 }
 0x1c6   : > { %s853_s12 = scalar_lea.hbm %s852_s11, 8  ;;  %s857_s27 = scalar_lea.hbm %s1139_s3, 16 }
 0x1c7   : > { %p854_p0 = scmp.ne.s32.totalorder %s852_s11, %s853_s12  ;;  %p858_p3 = scmp.lt.s32.totalorder %s852_s11, %s1139_s3 }
 0x1c8   : > { %p859_p4 = scmp.lt.s32.totalorder %s857_s27, %s853_s12 }
 0x1c9   : > { %p855_p1 = pnand %p854_p0, %p1011_p9 }
 0x1ca   : > { %p860_p5 = por %p859_p4, %p858_p3 }
 0x1cb   : > { %p856_p2 = pneg %p855_p1 }
 0x1cd   : > { %p861_p6 = pnand %p860_p5, %p856_p2 }
 0x23d   : > { %v407_v25 = vpop.f32.mrf.mxu1 }
 0x23e   : > { %410 = vst.msk [vmem:[%s318_s25] sm:$0xff] %vm330_vm0, %v407_v25 }
 0x23f   : > { %864 = shalt.err (!%p861_p6)
}
 0x240   : > { %642 = dma.vmem_to_hbm [thread:$0]  (%p1011_p9), %s432_s21, 128, %s434_s26, %s413_s10  }
 0x241 PF: > { %s460_s18 = sand.u32 1, %s907_s15   ;;  %p657_p7 = pnand %p609_p12, %p1018_p11 }
 0x242   : > { %s461_s22 = scalar_lea.sflag [#allocation4], %s460_s18 }
 0x243   : > { %p658_p8 = pneg %p657_p7 }
 0x245   : > { %898 = dma.done.wait (%p658_p8), %s461_s22, 128  }
 0x246   : > { %900 = vsyncadd (%p658_p8), %s461_s22, 4294967168  ;;  %s471_s23 = scalar_lea.sflag [#allocation10], %s460_s18 }
 0x247   : > { %902 = dma.done.wait (%p658_p8), %s471_s23, 128  }
 0x248   : > { %904 = vsyncadd (%p658_p8), %s471_s23, 4294967168  ;;  %s27_s20 = sadd.s32 1, %s927_s20   ;;  %s1156_s28 = sld [smem:[#allocation15_spill]] }
 0x249   : > { %p24_p10 = scmp.ge.s32.totalorder %s27_s20, 4   ;;  %s1157_s17 = sld [smem:[#allocation17_spill]] }
 0x24a   : > { %s1158_s29 = sld [smem:[#allocation16_spill]]  ;;  %s1159_s15 = smov %s911_s16 }
 0x24b   : > { %s1161_s18 = smov %s923_s19 }
 0x24c   :  { %26 = sbr.rel (!%p24_p10) target bundleno = 12 (0xc), region = 118 }
 0x24e   : > { %s1160_s16 = smov %s1156_s28 }
 0x250   : > { %s1162_s19 = smov %s1158_s29 }
 0x251   :  { %477 = vsyncpa [#allocation3], 1 }
 0x252   :  { %479 = vsyncpa [#allocation3 + $0x1], 1 }
 0x253   :  { %480 = vsyncpa [#allocation6], 1 }
 0x254   :  { %482 = vsyncpa [#allocation6 + $0x1], 1 }
 0x255   :  { %483 = vsyncpa [#allocation4], 1 }
 0x256   :  { %485 = vsyncpa [#allocation4 + $0x1], 1 }
 0x257   :  { %486 = vsyncpa [#allocation10], 1 }
 0x258   :  { %488 = vsyncpa [#allocation10 + $0x1], 1 }

</bundles_post_ra>
